<compile_context>
chip_gen: v6e
topology: v6e:2x2x1
jax: 0.10.0
libtpu: 0.0.40
codegen_flags: <defaults>
</compile_context>

<pallas_src>
import numpy as np

import jax
import jax.numpy as jnp
from jax.experimental import pallas as pl
from jax.experimental.pallas import tpu as pltpu


def _ceil_mul(a: int, m: int) -> int:
    return ((a + m - 1) // m) * m


# ---------------------------------------------------------------------------
# Pallas kernel factory: per-block TV partial sums into a resident VMEM
# plane-shaped accumulator; one final cross-lane reduce into the SMEM scalar.
# ---------------------------------------------------------------------------
def _make_tv_kernel(total_planes: int, tm: int, H: int, W: int, needs_mask: bool):
    def kernel(x_ref, o_ref, acc_ref):
        # x_ref  : VMEM [tm, H, W]  native-dtype tile of the flattened input
        # o_ref  : SMEM f32[1, 1]   scalar output (written once, at the end)
        # acc_ref: VMEM f32[H, W]   plane-shaped accumulator, grid-resident
        i = pl.program_id(0)

        @pl.when(i == 0)
        def _init():
            acc_ref[...] = jnp.zeros_like(acc_ref)
            o_ref[0, 0] = jnp.float32(0.0)

        # Cast to f32 in-kernel (input stays in its native dtype in HBM).
        x = x_ref[...].astype(jnp.float32)

        if needs_mask:
            # Zero out planes past the true extent (ragged last block).  The
            # diffs never cross planes, so zeroed planes contribute exactly 0.
            valid = total_planes - i * tm
            plane_idx = jax.lax.broadcasted_iota(jnp.int32, x.shape, 0)
            x = jnp.where(plane_idx < valid, x, 0.0)

        # Reduce only over the plane (major) axis per step: pure VPU adds.
        if W > 1:  # left-right differences (lane axis)
            lr = jnp.sum(jnp.abs(x[:, :, 1:] - x[:, :, :-1]), axis=0)  # (H, W-1)
            acc_ref[:, : W - 1] += lr
        if H > 1:  # top-bottom differences (sublane axis)
            tb = jnp.sum(jnp.abs(x[:, 1:, :] - x[:, :-1, :]), axis=0)  # (H-1, W)
            acc_ref[: H - 1, :] += tb

        # Single cross-lane reduction for the whole kernel.
        @pl.when(i == pl.num_programs(0) - 1)
        def _finalize():
            o_ref[0, 0] = jnp.sum(acc_ref[...])

    return kernel


# ---------------------------------------------------------------------------
# Wrapper: TVLoss.forward(x) for x of shape [..., H, W].
# ---------------------------------------------------------------------------
def tv_loss(x, *, vmem_budget_bytes: int = 16 << 20):
    """Total-variation loss: sum|dx| + sum|dy| over the last two dims (f32)."""
    x = jnp.asarray(x)
    if x.ndim < 2:
        raise ValueError("TVLoss expects an input with at least 2 dims [..., H, W]")

    *lead, H, W = x.shape
    M = int(np.prod(lead)) if lead else 1
    xf = x.reshape(M, H, W)  # native dtype; contiguous reshape, no HBM copy

    # --- VMEM-aware tile sizing (accounts for (sublane,128) layout padding).
    itemsize = int(jnp.dtype(xf.dtype).itemsize)
    sublane = max(8, 32 // max(itemsize, 1))  # f32:8, bf16:16, int8/fp8:32
    in_plane = _ceil_mul(H, sublane) * _ceil_mul(W, 128) * itemsize
    f32_plane = _ceil_mul(H, 8) * _ceil_mul(W, 128) * 4
    # 2x double-buffered input block + ~5 live f32 plane-sized intermediates
    # (f32 upcast, shifted slices, abs/diff temporaries).
    per_plane = 2 * in_plane + 5 * f32_plane
    tm = int(max(1, min(M, vmem_budget_bytes // per_plane)))
    g = int(pl.cdiv(M, tm))
    needs_mask = (M % tm) != 0

    # Explicit scoped-VMEM limit: generous but capped below v7x's 64 MiB
    # physical VMEM (plenty of headroom on v5e/v6e's 128 MiB).
    fixed_bytes = f32_plane + (1 << 16)  # accumulator scratch + slack
    vmem_limit = int(min(max(32 << 20, tm * per_plane + fixed_bytes), 60 << 20))

    kernel = _make_tv_kernel(M, tm, H, W, needs_mask)

    out = pl.pallas_call(
        kernel,
        out_shape=jax.ShapeDtypeStruct((1, 1), jnp.float32),
        grid=(g,),
        in_specs=[pl.BlockSpec((tm, H, W), lambda i: (i, 0, 0))],
        out_specs=pl.BlockSpec(
            (1, 1), lambda i: (0, 0), memory_space=pltpu.MemorySpace.SMEM
        ),
        scratch_shapes=[pltpu.VMEM((H, W), jnp.float32)],
        compiler_params=pltpu.CompilerParams(
            dimension_semantics=("arbitrary",),
            vmem_limit_bytes=vmem_limit,
        ),
    )(xf)
    return out[0, 0]


# ---------------------------------------------------------------------------
# Pure-numpy (float64) reference for correctness checking.
# ---------------------------------------------------------------------------
def _tv_ref(x):
    xn = np.asarray(x, dtype=np.float64)
    lr = np.abs(xn[..., :, 1:] - xn[..., :, :-1]).sum()
    tb = np.abs(xn[..., 1:, :] - xn[..., :-1, :]).sum()
    return lr + tb


if __name__ == "__main__":
    key = jax.random.PRNGKey(0)
    k1, k2, k3 = jax.random.split(key, 3)

    # Case 1: shape consistent with the module's typical NCHW input;
    # single-step grid, no masking path.
    x1 = jax.random.uniform(k1, (2, 4, 16, 16), dtype=jnp.float32)
    out1 = jax.block_until_ready(tv_loss(x1))
    np.testing.assert_allclose(
        np.asarray(out1, dtype=np.float64), _tv_ref(x1), rtol=1e-4
    )

    # Case 2: non-square spatial dims, plane count (9) not divisible by the
    # tile size; a small VMEM budget forces a multi-step grid with a ragged
    # last block, exercising the in-kernel plane mask + resident accumulator.
    x2 = jax.random.uniform(k2, (3, 3, 24, 40), dtype=jnp.float32)
    out2 = jax.block_until_ready(tv_loss(x2, vmem_budget_bytes=200_000))
    np.testing.assert_allclose(
        np.asarray(out2, dtype=np.float64), _tv_ref(x2), rtol=1e-4
    )

    # Case 3: bf16 input fed in its native dtype (no wrapper upcast);
    # accumulation still in f32 inside the kernel.
    x3 = jax.random.uniform(k3, (2, 3, 16, 16), dtype=jnp.bfloat16)
    out3 = jax.block_until_ready(tv_loss(x3))
    ref3 = _tv_ref(np.asarray(x3.astype(jnp.float32)))
    np.testing.assert_allclose(np.asarray(out3, dtype=np.float64), ref3, rtol=1e-3)

    print("KERNEL_OK")
</pallas_src>

<mosaic_0001>
module attributes {stable_mosaic.version = 11 : i64} {
  func.func @kernel(%arg0: i32, %arg1: memref<8x16x16xf32, #tpu.memory_space<vmem>>, %arg2: memref<1x1xf32, #tpu.memory_space<smem>>, %arg3: memref<16x16xf32, #tpu.memory_space<vmem>>) attributes {dimension_semantics = [#tpu.dimension_semantics<arbitrary>], iteration_bounds = array<i64: 1>, scalar_prefetch = 0 : i64, scratch_operands = 1 : i64, tpu.core_type = #tpu.core_type<tc>, window_params = [{transform_indices = @transform_0, window_bounds = array<i64: 8, 16, 16>}, {transform_indices = @transform_1, window_bounds = array<i64: 1, 1>}]} {
    %c0_i32 = arith.constant 0 : i32
    %0 = arith.cmpi eq, %arg0, %c0_i32 : i32
    %1 = arith.extui %0 : i1 to i32
    %c0_i32_0 = arith.constant 0 : i32
    %2 = arith.cmpi ne, %1, %c0_i32_0 : i32
    scf.if %2 {
      %cst_14 = arith.constant 0.000000e+00 : f32
      %23 = vector.broadcast %cst_14 : f32 to vector<16x16xf32>
      %c0_15 = arith.constant 0 : index
      %c0_16 = arith.constant 0 : index
      %24 = vector.load %arg3[%c0_15, %c0_16] : memref<16x16xf32, #tpu.memory_space<vmem>>, vector<16x16xf32>
      tpu.vector_store %arg3[%c0_15, %c0_16], %23 {strides = array<i32>} : memref<16x16xf32, #tpu.memory_space<vmem>>, vector<16x16xf32>,
      %cst_17 = arith.constant 0.000000e+00 : f32
      %c0_18 = arith.constant 0 : index
      %c0_19 = arith.constant 0 : index
      %25 = memref.load %arg2[%c0_18, %c0_19] : memref<1x1xf32, #tpu.memory_space<smem>>
      memref.store %cst_17, %arg2[%c0_18, %c0_19] : memref<1x1xf32, #tpu.memory_space<smem>>
    } else {
    }
    %c0 = arith.constant 0 : index
    %c0_1 = arith.constant 0 : index
    %c0_2 = arith.constant 0 : index
    %3 = vector.load %arg1[%c0, %c0_1, %c0_2] : memref<8x16x16xf32, #tpu.memory_space<vmem>>, vector<8x16x16xf32>
    %4 = vector.extract_strided_slice %3 {offsets = [0, 0, 1], sizes = [8, 16, 15], strides = [1, 1, 1]} : vector<8x16x16xf32> to vector<8x16x15xf32>
    %5 = vector.extract_strided_slice %3 {offsets = [0, 0, 0], sizes = [8, 16, 15], strides = [1, 1, 1]} : vector<8x16x16xf32> to vector<8x16x15xf32>
    %6 = arith.subf %4, %5 : vector<8x16x15xf32>
    %7 = math.absf %6 : vector<8x16x15xf32>
    %cst = arith.constant dense<0.000000e+00> : vector<16x15xf32>
    %8 = vector.multi_reduction <add>, %7, %cst [0] : vector<8x16x15xf32> to vector<16x15xf32>
    %c0_3 = arith.constant 0 : index
    %c0_4 = arith.constant 0 : index
    %9 = vector.load %arg3[%c0_3, %c0_4] : memref<16x16xf32, #tpu.memory_space<vmem>>, vector<16x15xf32>
    %10 = arith.addf %9, %8 : vector<16x15xf32>
    %c0_5 = arith.constant 0 : index
    %c0_6 = arith.constant 0 : index
    %11 = vector.load %arg3[%c0_5, %c0_6] : memref<16x16xf32, #tpu.memory_space<vmem>>, vector<16x15xf32>
    tpu.vector_store %arg3[%c0_5, %c0_6], %10 {strides = array<i32>} : memref<16x16xf32, #tpu.memory_space<vmem>>, vector<16x15xf32>,
    %12 = vector.extract_strided_slice %3 {offsets = [0, 1, 0], sizes = [8, 15, 16], strides = [1, 1, 1]} : vector<8x16x16xf32> to vector<8x15x16xf32>
    %13 = vector.extract_strided_slice %3 {offsets = [0, 0, 0], sizes = [8, 15, 16], strides = [1, 1, 1]} : vector<8x16x16xf32> to vector<8x15x16xf32>
    %14 = arith.subf %12, %13 : vector<8x15x16xf32>
    %15 = math.absf %14 : vector<8x15x16xf32>
    %cst_7 = arith.constant dense<0.000000e+00> : vector<15x16xf32>
    %16 = vector.multi_reduction <add>, %15, %cst_7 [0] : vector<8x15x16xf32> to vector<15x16xf32>
    %c0_8 = arith.constant 0 : index
    %c0_9 = arith.constant 0 : index
    %17 = vector.load %arg3[%c0_8, %c0_9] : memref<16x16xf32, #tpu.memory_space<vmem>>, vector<15x16xf32>
    %18 = arith.addf %17, %16 : vector<15x16xf32>
    %c0_10 = arith.constant 0 : index
    %c0_11 = arith.constant 0 : index
    %19 = vector.load %arg3[%c0_10, %c0_11] : memref<16x16xf32, #tpu.memory_space<vmem>>, vector<15x16xf32>
    tpu.vector_store %arg3[%c0_10, %c0_11], %18 {strides = array<i32>} : memref<16x16xf32, #tpu.memory_space<vmem>>, vector<15x16xf32>,
    %c0_i32_12 = arith.constant 0 : i32
    %20 = arith.cmpi eq, %arg0, %c0_i32_12 : i32
    %21 = arith.extui %20 : i1 to i32
    %c0_i32_13 = arith.constant 0 : i32
    %22 = arith.cmpi ne, %21, %c0_i32_13 : i32
    scf.if %22 {
      %c0_14 = arith.constant 0 : index
      %c0_15 = arith.constant 0 : index
      %23 = vector.load %arg3[%c0_14, %c0_15] : memref<16x16xf32, #tpu.memory_space<vmem>>, vector<16x16xf32>
      %24 = vector.shape_cast %23 : vector<16x16xf32> to vector<1x16x16xf32>
      %cst_16 = arith.constant dense<0.000000e+00> : vector<1xf32>
      %25 = vector.multi_reduction <add>, %24, %cst_16 [1, 2] : vector<1x16x16xf32> to vector<1xf32>
      %26 = vector.shape_cast %25 : vector<1xf32> to vector<1x1x1xf32>
      %27 = vector.extract %26[0, 0, 0] : f32 from vector<1x1x1xf32>
      %c0_17 = arith.constant 0 : index
      %c0_18 = arith.constant 0 : index
      %28 = memref.load %arg2[%c0_17, %c0_18] : memref<1x1xf32, #tpu.memory_space<smem>>
      memref.store %27, %arg2[%c0_17, %c0_18] : memref<1x1xf32, #tpu.memory_space<smem>>
    } else {
    }
    return
  }
  func.func @transform_0(%arg0: i32) -> (i32, i32, i32) {
    %c0_i32 = arith.constant 0 : i32
    %c0_i32_0 = arith.constant 0 : i32
    %c0_i32_1 = arith.constant 0 : i32
    return %arg0, %c0_i32, %c0_i32_0 : i32, i32, i32
  }
  func.func @transform_1(%arg0: i32) -> (i32, i32) {
    %c0_i32 = arith.constant 0 : i32
    %c0_i32_0 = arith.constant 0 : i32
    %c0_i32_1 = arith.constant 0 : i32
    return %c0_i32, %c0_i32_0 : i32, i32
  }
}

</mosaic_0001>

<bundles_post_ra>
// kernel: tpu_custom_call.1
= control target key start
LH: loop header
LB: loop body
LE: loop exit
PB: predicated region body
PF: predicated region fallthrough
CT: control target
= control target key end

     0   :  { %6 = vsyncpa [#allocation4], 0  ;;  %s565_s0 = inlined_call_operand.hbm [shape: f32[8,16,16], index: 0, kind: input, shape index: {}]   ;;  %s566_s1 = inlined_call_operand.hbm [shape: f32[1,1], index: 1, kind: output, shape index: {}]  }
   0x1   :  { %7 = vsyncpa [#allocation5], 0  ;;  %s385_s6 = smov [#allocation3]  }
   0x2   :  { %s13_s7 = sshll.u32 %s385_s6, 4  ;;  %s14_s7 = int_to_ptr.vmem [resolvable:$true] %s13_s7 }
   0x3   :  { %s361_s8 = scalar_lea.vmem %s14_s7, 2048  ;;  %p366_p1 = scmp.lt.s32.totalorder %s14_s7, %s14_s7 }
   0x4   :  { %p362_p0 = scmp.ne.s32.totalorder %s14_s7, %s361_s8  ;;  %p367_p2 = scmp.lt.s32.totalorder %s361_s8, %s361_s8 }
   0x6   :  { %p368_p3 = por %p367_p2, %p366_p1 }
   0x8   :  { %p369_p4 = pnand %p368_p3, %p362_p0 }
   0xa   :  { %372 = shalt.err (!%p369_p4)
}
   0xb   :  { %s386_s9 = smov 128   ;;  %s387_s10 = smov 8  }
   0xc   :  { %19 = dma.hbm_to_vmem [thread:$0]  %s565_s0, 2048, %s14_s7, [#allocation4], %s386_s9, %s386_s9, %s387_s10  }
   0xd   :  { %381 = dma.done.wait [#allocation4], 2048  }
   0xe   :  { %382 = vsyncadd [#allocation4], 4294965248  ;;  %v405_v0 = vld [vmem:[#allocation3 + $0x10] sm:$0xff]  ;;  %v407_v1 = vld [vmem:[#allocation3] sm:$0xff]  ;;  %s388_s13 = smov 1   ;;  %vm27_vm0 = vcmask 130048  }
   0xf   :  { %68 = vrot.lane.b32.xlu1 %v405_v0, %s388_s13  ;;  %64 = vrot.lane.b32.xlu0 %v407_v1, %s388_s13  ;;  %v413_v2 = vld [vmem:[#allocation3 + $0x18] sm:$0xff]  ;;  %v415_v3 = vld [vmem:[#allocation3 + $0x8] sm:$0xff]  ;;  %v423_v5 = vld [vmem:[#allocation3 + $0x20] sm:$0xff]  ;;  %v389_v14 = vmov 0.0   ;;  %vm144_vm1 = vcmask 130056   ;;  %s390_s0 = smov 127  }
  0x10   :  { %v421_v4 = vld [vmem:[#allocation3 + $0x28] sm:$0xff]  ;;  %v429_v6 = vld [vmem:[#allocation3 + $0x38] sm:$0xff]  ;;  %v431_v7 = vld [vmem:[#allocation3 + $0x30] sm:$0xff]  ;;  %29 = vst.msk [vmem:[#allocation2 + $0x8] sm:$0xff] %vm27_vm0, %v389_v14  ;;  %vm190_vm2 = vcmask 1040384   ;;  %vm263_vm3 = vcmask 130049  }
  0x11   :  { %v437_v8 = vld [vmem:[#allocation3 + $0x48] sm:$0xff]  ;;  %v439_v9 = vld [vmem:[#allocation3 + $0x40] sm:$0xff]  ;;  %v445_v10 = vld [vmem:[#allocation3 + $0x58] sm:$0xff]  ;;  %28 = vst.msk [vmem:[#allocation2] sm:$0xff] %vm27_vm0, %v389_v14  ;;  %vm187_vm4 = vcmask 121856   ;;  %vm299_vm5 = vcmask 1046528  }
  0x12   :  { %v447_v11 = vld [vmem:[#allocation3 + $0x50] sm:$0xff]  ;;  %v453_v12 = vld [vmem:[#allocation3 + $0x68] sm:$0xff]  ;;  %v455_v13 = vld [vmem:[#allocation3 + $0x60] sm:$0xff]  ;;  %vm308_vm6 = vcmask 129024   ;;  %s391_s15 = smov [#allocation6]  }
  0x13   :  { %70 = vrot.lane.b32.xlu1 %v413_v2, %s388_s13  ;;  %66 = vrot.lane.b32.xlu0 %v415_v3, %s388_s13  ;;  %v463_v15 = vld [vmem:[#allocation3 + $0x78] sm:$0xff]  ;;  %v465_v16 = vld [vmem:[#allocation3 + $0x70] sm:$0xff] }
  0x17   :  { %74 = vrot.lane.b32.xlu1 %v421_v4, %s388_s13  ;;  %72 = vrot.lane.b32.xlu0 %v423_v5, %s388_s13 }
  0x1b   :  { %78 = vrot.lane.b32.xlu1 %v429_v6, %s388_s13  ;;  %76 = vrot.lane.b32.xlu0 %v431_v7, %s388_s13 }
  0x1f   :  { %82 = vrot.lane.b32.xlu1 %v437_v8, %s388_s13  ;;  %80 = vrot.lane.b32.xlu0 %v439_v9, %s388_s13 }
  0x23   :  { %86 = vrot.lane.b32.xlu1 %v445_v10, %s388_s13  ;;  %84 = vrot.lane.b32.xlu0 %v447_v11, %s388_s13 }
  0x27   :  { %90 = vrot.lane.b32.xlu1 %v453_v12, %s388_s13  ;;  %88 = vrot.lane.b32.xlu0 %v455_v13, %s388_s13 }
  0x2b   :  { %94 = vrot.lane.b32.xlu1 %v463_v15, %s388_s13  ;;  %92 = vrot.lane.b32.xlu0 %v465_v16, %s388_s13 }
  0x81   :  { %v69_v17 = vpop.permute.xlu1 %68  ;;  %v65_v18 = vpop.permute.xlu0 %64 }
  0x82   :  { %v114_v23 = vsub.f32 %v405_v0, %v69_v17  ;;  %v112_v24 = vsub.f32 %v407_v1, %v65_v18 }
  0x84   :  { %v130_v31 = vand.u32 2147483647, %v114_v23  ;;  %v128_v32 = vand.u32 2147483647, %v112_v24 }
  0x85   :  { %v71_v19 = vpop.permute.xlu1 %70  ;;  %v67_v20 = vpop.permute.xlu0 %66 }
  0x86   :  { %v115_v25 = vsub.f32 %v413_v2, %v71_v19  ;;  %v113_v26 = vsub.f32 %v415_v3, %v67_v20  ;;  %v146_v43 = vsel %vm144_vm1, %v130_v31, 0.0  ;;  %v145_v44 = vsel %vm144_vm1, %v128_v32, 0.0 }
  0x87   :  { %v147_v57 = vadd.f32 %v146_v43, %v145_v44 }
  0x88   :  { %v131_v33 = vand.u32 2147483647, %v115_v25  ;;  %v129_v34 = vand.u32 2147483647, %v113_v26 }
  0x89   :  { %v75_v21 = vpop.permute.xlu1 %74  ;;  %v73_v22 = vpop.permute.xlu0 %72 }
  0x8a   :  { %v117_v27 = vsub.f32 %v421_v4, %v75_v21  ;;  %v116_v28 = vsub.f32 %v423_v5, %v73_v22  ;;  %v161_v45 = vsel %vm144_vm1, %v131_v33, 0.0  ;;  %v160_v46 = vsel %vm144_vm1, %v129_v34, 0.0 }
  0x8b   :  { %v162_v58 = vadd.f32 %v161_v45, %v160_v46 }
  0x8c   :  { %v133_v37 = vand.u32 2147483647, %v117_v27  ;;  %v132_v38 = vand.u32 2147483647, %v116_v28 }
  0x8d   :  { %v79_v29 = vpop.permute.xlu1 %78  ;;  %v77_v30 = vpop.permute.xlu0 %76 }
  0x8e   :  { %v119_v35 = vsub.f32 %v429_v6, %v79_v29  ;;  %v118_v36 = vsub.f32 %v431_v7, %v77_v30  ;;  %v163_v49 = vsel %vm144_vm1, %v133_v37, 0.0  ;;  %v148_v50 = vsel %vm144_vm1, %v132_v38, 0.0 }
  0x8f   :  { %v164_v63 = vadd.f32 %v163_v49, %v162_v58  ;;  %v149_v14 = vadd.f32 %v148_v50, %v147_v57  ;;  %v195_v49 = vrot.slane %v413_v2, 7  ;;  %v192_v50 = vrot.slane %v415_v3, 7 }
  0x90   :  { %v135_v47 = vand.u32 2147483647, %v119_v35  ;;  %v134_v48 = vand.u32 2147483647, %v118_v36 }
  0x91   :  { %v83_v39 = vpop.permute.xlu1 %82  ;;  %v81_v40 = vpop.permute.xlu0 %80 }
  0x92   :  { %v121_v41 = vsub.f32 %v437_v8, %v83_v39  ;;  %v120_v42 = vsub.f32 %v439_v9, %v81_v40  ;;  %v165_v59 = vsel %vm144_vm1, %v135_v47, 0.0  ;;  %v150_v60 = vsel %vm144_vm1, %v134_v48, 0.0 }
  0x93   :  { %v166_v23 = vadd.f32 %v165_v59, %v164_v63  ;;  %v151_v24 = vadd.f32 %v150_v60, %v149_v14  ;;  %v194_v47 = vrot.slane %v405_v0, 7  ;;  %v191_v48 = vrot.slane %v407_v1, 7 }
  0x94   :  { %v137_v53 = vand.u32 2147483647, %v121_v41  ;;  %v136_v54 = vand.u32 2147483647, %v120_v42  ;;  %v201_v60 = vrot.slane %v429_v6, 7 }
  0x95   :  { %v87_v51 = vpop.permute.xlu1 %86  ;;  %v85_v52 = vpop.permute.xlu0 %84 }
  0x96   :  { %v123_v55 = vsub.f32 %v445_v10, %v87_v51  ;;  %v122_v56 = vsub.f32 %v447_v11, %v85_v52  ;;  %v167_v19 = vsel %vm144_vm1, %v137_v53, 0.0  ;;  %v152_v20 = vsel %vm144_vm1, %v136_v54, 0.0 }
  0x97   :  { %v168_v29 = vadd.f32 %v167_v19, %v166_v23  ;;  %v153_v30 = vadd.f32 %v152_v20, %v151_v24  ;;  %v196_v51 = vsel %vm190_vm2, %v194_v47, %v195_v49  ;;  %v193_v52 = vsel %vm190_vm2, %v191_v48, %v192_v50 }
  0x98   :  { %v139_v61 = vand.u32 2147483647, %v123_v55  ;;  %v138_v62 = vand.u32 2147483647, %v122_v56  ;;  %v198_v53 = vrot.slane %v421_v4, 7  ;;  %v197_v54 = vrot.slane %v423_v5, 7 }
  0x99   :  { %v91_v17 = vpop.permute.xlu1 %90  ;;  %v89_v18 = vpop.permute.xlu0 %88  ;;  %v233_v55 = vsub.f32 %v405_v0, %v194_v47  ;;  %v231_v56 = vsub.f32 %v407_v1, %v191_v48  ;;  %v234_v57 = vsub.f32 %v413_v2, %v196_v51  ;;  %v232_v58 = vsub.f32 %v415_v3, %v193_v52 }
  0x9a   :  { %v125_v21 = vsub.f32 %v453_v12, %v91_v17  ;;  %v124_v22 = vsub.f32 %v455_v13, %v89_v18  ;;  %v169_v25 = vsel %vm144_vm1, %v139_v61, 0.0  ;;  %v154_v26 = vsel %vm144_vm1, %v138_v62, 0.0 }
  0x9b   :  { %v170_v37 = vadd.f32 %v169_v25, %v168_v29  ;;  %v155_v38 = vadd.f32 %v154_v26, %v153_v30  ;;  %v199_v59 = vsel %vm190_vm2, %v197_v54, %v198_v53  ;;  %v200_v61 = vrot.slane %v431_v7, 7 }
  0x9c   :  { %v141_v27 = vand.u32 2147483647, %v125_v21  ;;  %v140_v28 = vand.u32 2147483647, %v124_v22  ;;  %v249_v62 = vand.u32 2147483647, %v233_v55  ;;  %v235_v14 = vsub.f32 %v423_v5, %v197_v54 }
  0x9d   :  { %v95_v31 = vpop.permute.xlu1 %94  ;;  %v93_v32 = vpop.permute.xlu0 %92  ;;  %v247_v63 = vand.u32 2147483647, %v231_v56  ;;  %v250_v17 = vand.u32 2147483647, %v234_v57  ;;  %v248_v18 = vand.u32 2147483647, %v232_v58  ;;  %v236_v0 = vsub.f32 %v421_v4, %v199_v59 }
  0x9e   :  { %v171_v33 = vsel %vm144_vm1, %v141_v27, 0.0  ;;  %v156_v34 = vsel %vm144_vm1, %v140_v28, 0.0  ;;  %v127_v35 = vsub.f32 %v463_v15, %v95_v31  ;;  %v126_v36 = vsub.f32 %v465_v16, %v93_v32 }
  0x9f   :  { %v172_v41 = vadd.f32 %v171_v33, %v170_v37  ;;  %v157_v42 = vadd.f32 %v156_v34, %v155_v38  ;;  %v202_v1 = vsel %vm190_vm2, %v200_v61, %v201_v60  ;;  %v204_v2 = vrot.slane %v437_v8, 7 }
  0xa0   :  { %v143_v39 = vand.u32 2147483647, %v127_v35  ;;  %v142_v40 = vand.u32 2147483647, %v126_v36  ;;  %v203_v3 = vrot.slane %v439_v9, 7  ;;  %v265_v19 = vsel %vm263_vm3, %v249_v62, 0.0 }
  0xa1   :  { %v264_v20 = vsel %vm263_vm3, %v247_v63, 0.0  ;;  %v251_v21 = vand.u32 2147483647, %v235_v14  ;;  %v237_v22 = vsub.f32 %v431_v7, %v200_v61  ;;  %v281_v5 = vsel %vm27_vm0, %v250_v17, 0.0 }
  0xa2   :  { %v173_v43 = vsel %vm144_vm1, %v143_v39, 0.0  ;;  %v158_v44 = vsel %vm144_vm1, %v142_v40, 0.0  ;;  %v280_v23 = vsel %vm27_vm0, %v248_v18, 0.0  ;;  %v252_v24 = vand.u32 2147483647, %v236_v0 }
  0xa3   :  { %v174_v45 = vadd.f32 %v173_v43, %v172_v41  ;;  %v159_v46 = vadd.f32 %v158_v44, %v157_v42  ;;  %v238_v4 = vsub.f32 %v429_v6, %v202_v1  ;;  %v205_v25 = vsel %vm190_vm2, %v203_v3, %v204_v2  ;;  %v176_v2 = vld [vmem:[#allocation2 + $0x8] sm:$0xff] }
  0xa4   :  { %v207_v26 = vrot.slane %v445_v10, 7  ;;  %v206_v27 = vrot.slane %v447_v11, 7  ;;  %v266_v28 = vadd.f32 %v265_v19, %v264_v20  ;;  %v282_v29 = vadd.f32 %v281_v5, %v280_v23 }
  0xa5   :  { %181 = vrot.lane.b32.xlu1 %v174_v45, %s390_s0  ;;  %179 = vrot.lane.b32.xlu0 %v159_v46, %s390_s0  ;;  %v267_v30 = vsel %vm263_vm3, %v251_v21, 0.0  ;;  %v253_v31 = vand.u32 2147483647, %v237_v22  ;;  %v283_v7 = vsel %vm27_vm0, %v252_v24, 0.0  ;;  %v254_v32 = vand.u32 2147483647, %v238_v4 }
  0xa6   :  { %v239_v33 = vsub.f32 %v439_v9, %v203_v3  ;;  %v240_v34 = vsub.f32 %v437_v8, %v205_v25  ;;  %v208_v6 = vsel %vm190_vm2, %v206_v27, %v207_v26  ;;  %v210_v35 = vrot.slane %v453_v12, 7  ;;  %v175_v3 = vld [vmem:[#allocation2] sm:$0xff] }
  0xa7   :  { %v209_v36 = vrot.slane %v455_v13, 7  ;;  %v268_v37 = vadd.f32 %v267_v30, %v266_v28  ;;  %v284_v38 = vadd.f32 %v283_v7, %v282_v29  ;;  %v269_v39 = vsel %vm263_vm3, %v253_v31, 0.0 }
  0xa8   :  { %v241_v40 = vsub.f32 %v447_v11, %v206_v27  ;;  %v285_v41 = vsel %vm27_vm0, %v254_v32, 0.0  ;;  %v255_v42 = vand.u32 2147483647, %v239_v33  ;;  %v256_v43 = vand.u32 2147483647, %v240_v34 }
  0xa9   :  { %v242_v9 = vsub.f32 %v445_v10, %v208_v6  ;;  %v211_v8 = vsel %vm190_vm2, %v209_v36, %v210_v35  ;;  %v213_v44 = vrot.slane %v463_v15, 7  ;;  %v212_v45 = vrot.slane %v465_v16, 7 }
  0xaa   :  { %v270_v46 = vadd.f32 %v269_v39, %v268_v37  ;;  %v286_v47 = vadd.f32 %v285_v41, %v284_v38  ;;  %v257_v48 = vand.u32 2147483647, %v241_v40  ;;  %v243_v49 = vsub.f32 %v455_v13, %v209_v36 }
  0xab   :  { %v271_v50 = vsel %vm263_vm3, %v255_v42, 0.0  ;;  %v287_v11 = vsel %vm27_vm0, %v256_v43, 0.0  ;;  %v258_v51 = vand.u32 2147483647, %v242_v9  ;;  %v244_v52 = vsub.f32 %v453_v12, %v211_v8 }
  0xac   :  { %v214_v10 = vsel %vm190_vm2, %v212_v45, %v213_v44  ;;  %v272_v53 = vadd.f32 %v271_v50, %v270_v46  ;;  %v288_v54 = vadd.f32 %v287_v11, %v286_v47  ;;  %v273_v55 = vsel %vm263_vm3, %v257_v48, 0.0 }
  0xad   :  { %v259_v56 = vand.u32 2147483647, %v243_v49  ;;  %v289_v57 = vsel %vm27_vm0, %v258_v51, 0.0  ;;  %v260_v58 = vand.u32 2147483647, %v244_v52  ;;  %v245_v59 = vsub.f32 %v465_v16, %v212_v45 }
  0xae   :  { %v246_v13 = vsub.f32 %v463_v15, %v214_v10  ;;  %v274_v60 = vadd.f32 %v273_v55, %v272_v53  ;;  %v290_v61 = vadd.f32 %v289_v57, %v288_v54 }
  0xaf   :  { %v275_v62 = vsel %vm263_vm3, %v259_v56, 0.0  ;;  %v291_v12 = vsel %vm27_vm0, %v260_v58, 0.0  ;;  %v261_v63 = vand.u32 2147483647, %v245_v59 }
  0xb0   :  { %v262_v14 = vand.u32 2147483647, %v246_v13  ;;  %v276_v17 = vadd.f32 %v275_v62, %v274_v60  ;;  %v292_v18 = vadd.f32 %v291_v12, %v290_v61 }
  0xb1   :  { %v277_v0 = vsel %vm263_vm3, %v261_v63, 0.0 }
  0xb2   :  { %v293_v1 = vsel %vm27_vm0, %v262_v14, 0.0  ;;  %v278_v19 = vadd.f32 %v277_v0, %v276_v17 }
  0xb3   :  { %v294_v16 = vadd.f32 %v293_v1, %v292_v18 }
  0xb4   :  { %v300_v5 = vrot.slane %v278_v19, 1 }
  0xb5   :  { %v301_v23 = vrot.slane %v294_v16, 1 }
  0xb7   :  { %v302_v24 = vsel %vm299_vm5, %v300_v5, %v301_v23 }
 0x117   :  { %v182_v15 = vpop.permute.xlu1 %181  ;;  %v180_v20 = vpop.permute.xlu0 %179 }
 0x118   :  { %v186_v21 = vadd.f32 %v182_v15, %v176_v2  ;;  %v185_v22 = vadd.f32 %v180_v20, %v175_v3 }
 0x11a   :  { %189 = vst.msk [vmem:[#allocation2 + $0x8] sm:$0xff] %vm187_vm4, %v186_v21  ;;  %188 = vst.msk [vmem:[#allocation2] sm:$0xff] %vm187_vm4, %v185_v22 }
 0x121   :  { %v296_v4 = vld [vmem:[#allocation2 + $0x8] sm:$0x7f]  ;;  %v295_v25 = vld [vmem:[#allocation2] sm:$0xff] }
 0x122   :  { %v306_v26 = vadd.f32 %v301_v23, %v296_v4  ;;  %v305_v27 = vadd.f32 %v302_v24, %v295_v25 }
 0x124   :  { %309 = vst.msk [vmem:[#allocation2 + $0x8] sm:$0x7f] %vm308_vm6, %v306_v26 }
 0x125   :  { %307 = vst.msk [vmem:[#allocation2] sm:$0xff] %vm27_vm0, %v305_v27 }
 0x12b   :  { %v314_v29 = vld [vmem:[#allocation2 + $0x8] sm:$0xff] }
 0x12c   :  { %v313_v28 = vld [vmem:[#allocation2] sm:$0xff]  ;;  %v316_v31 = vsel %vm27_vm0, %v314_v29, 0.0 }
 0x12d   :  { %v315_v30 = vsel %vm27_vm0, %v313_v28, 0.0 }
 0x12e   :  { %v317_v7 = vadd.f32 %v316_v31, %v315_v30 }
 0x130   :  { %318 = vadd.xlane.f32.xlu0 %v317_v7 }
 0x1b9   :  { %v319_v32 = vpop.xlane.xlu0 %318 }
 0x1ba   :  { %v320_v33 = vrot.slane %v319_v32, 4 }
 0x1bc   :  { %v321_v34 = vadd.f32 %v320_v33, %v319_v32 }
 0x1be   :  { %v322_v6 = vrot.slane %v321_v34, 2 }
 0x1c0   :  { %v323_v35 = vadd.f32 %v322_v6, %v321_v34 }
 0x1c2   :  { %v324_v36 = vrot.slane %v323_v35, 1 }
 0x1c4   :  { %v325_v37 = vadd.f32 %v324_v36, %v323_v35 }
 0x1c6   :  { %343 = vpush %v325_v37 }
 0x1f7   :  { %s344_s14 = spop %343 }
 0x1f8   :  { %328 = sst [smem:[#allocation6]] %s344_s14 }
 0x1f9   :  { %336 = dma.smem_to_hbm %s391_s15, 16, %s566_s1, [#allocation5]  }
 0x1fa   :  { %383 = dma.done.wait [#allocation5], 16  }
 0x1fb   :  { %384 = vsyncadd [#allocation5], 4294967280 }
 0x1fc   :  { %340 = sfence }
 0x1fd   :  { %341 = vsyncpa [#allocation4], 1 }
 0x1fe   :  { %342 = vsyncpa [#allocation5], 1 }

</bundles_post_ra>
